<compile_context>
chip_gen: v7x
topology: tpu7x:2x2x1
jax: 0.10.0
libtpu: 0.0.40
codegen_flags: <defaults>
</compile_context>

<pallas_src>
import functools

import jax
import jax.numpy as jnp
from jax.experimental import pallas as pl
from jax.experimental.pallas import tpu as pltpu


def _round_up(x, m):
    return ((x + m - 1) // m) * m


def _conv_bn_relu_kernel(patch_ref, w_ref, bias_ref, o_ref):
    """One lane tile per grid step.

    patch_ref : (CKp, tile_L)     VMEM  (im2col columns, batch folded into lanes)
    w_ref     : (C_out_p, CKp)    VMEM  (weights with BN scale folded in)
    bias_ref  : (C_out_p, 1)      VMEM  (BN shift or conv bias)
    o_ref     : (C_out_p, tile_L) VMEM
    """
    y = jnp.dot(w_ref[...], patch_ref[...],
                preferred_element_type=jnp.float32)            # MXU
    o_ref[...] = jnp.maximum(y + bias_ref[...], 0.0).astype(o_ref.dtype)


@functools.partial(jax.jit, static_argnames=("kernel_size", "stride", "padding"))
def conv1d_bn_relu(x, w, scale, bias, *, kernel_size, stride, padding):
    """x: (N, C_in, L); w: (C_out, C_in, K); scale, bias: (C_out,). Returns (N, C_out, L_out)."""
    x = x.astype(jnp.float32)
    n, c_in, l = x.shape
    c_out = w.shape[0]
    k = kernel_size
    l_out = (l + 2 * padding - k) // stride + 1
    ck = c_in * k

    # ---- im2col in plain JAX (glue); batch folded into the lane dim --------
    xp = jnp.pad(x, ((0, 0), (0, 0), (padding, padding)))
    starts = jnp.arange(l_out) * stride
    cols = jnp.stack([xp[:, :, kk + starts] for kk in range(k)], axis=2)  # (N,C,K,L_out)
    patches = cols.transpose(1, 2, 0, 3).reshape(ck, n * l_out)           # (CK, N*L_out)

    # ---- fold BN scale into the weights -------------------------------------
    w_flat = (w.reshape(c_out, ck).astype(jnp.float32)
              * scale.astype(jnp.float32)[:, None])                       # (C_out, CK)

    # ---- pad to TPU-friendly shapes (exact: zero-pad, slice back) ----------
    ck_p = _round_up(ck, 8)
    c_out_p = _round_up(c_out, 8)
    total = n * l_out

    # Lane tile: as wide as comfortably fits double-buffered in VMEM, capped
    # at 2048 and never wider than the (128-aligned) problem itself.
    bytes_per_col = 4 * (ck_p + c_out_p)            # one input + one output column
    budget = 8 * 1024 * 1024                        # per-step double-buffered budget
    tile_cap = max(128, (budget // (2 * max(bytes_per_col, 1))) // 128 * 128)
    tile_l = min(2048, tile_cap, _round_up(total, 128))
    total_p = _round_up(total, tile_l)

    w_p = jnp.zeros((c_out_p, ck_p), jnp.float32).at[:c_out, :ck].set(w_flat)
    b_p = jnp.zeros((c_out_p, 1), jnp.float32).at[:c_out, 0].set(
        bias.astype(jnp.float32))
    patches_p = jnp.zeros((ck_p, total_p), jnp.float32).at[:ck, :total].set(patches)

    grid = (total_p // tile_l,)

    cost = pl.CostEstimate(
        flops=2 * c_out * ck * total,
        transcendentals=0,
        bytes_accessed=4 * (ck_p * total_p + c_out_p * ck_p + c_out_p
                            + c_out_p * total_p),
    )

    out_p = pl.pallas_call(
        _conv_bn_relu_kernel,
        out_shape=jax.ShapeDtypeStruct((c_out_p, total_p), jnp.float32),
        grid_spec=pltpu.PrefetchScalarGridSpec(
            num_scalar_prefetch=0,
            grid=grid,
            in_specs=[
                pl.BlockSpec((ck_p, tile_l), lambda i: (0, i)),
                pl.BlockSpec((c_out_p, ck_p), lambda i: (0, 0)),   # resident
                pl.BlockSpec((c_out_p, 1), lambda i: (0, 0)),      # resident
            ],
            out_specs=pl.BlockSpec((c_out_p, tile_l), lambda i: (0, i)),
        ),
        compiler_params=pltpu.CompilerParams(
            dimension_semantics=("parallel",),
            vmem_limit_bytes=32 * 1024 * 1024,
        ),
        cost_estimate=cost,
    )(patches_p, w_p, b_p)

    out = out_p[:c_out, :total].reshape(c_out, n, l_out).transpose(1, 0, 2)
    return out


def reference_conv1d_bn_relu(x, w, scale, bias, *, stride, padding):
    """Pure-JAX reference (conv -> folded BN affine -> relu)."""
    y = jax.lax.conv_general_dilated(
        x, w, window_strides=(stride,), padding=[(padding, padding)],
        dimension_numbers=("NCH", "OIH", "NCH"))
    y = y * scale[None, :, None] + bias[None, :, None]
    return jnp.maximum(y, 0.0)


if __name__ == "__main__":
    # Mirrors Conv1dBnRelu(in_channel=4, out_channel=8, kernel_size=3,
    # stride=1, padding=1, is_bn=True); BN eps=0.005 per the module's partial.
    in_channel, out_channel = 4, 8
    kernel_size, stride, padding = 3, 1, 1
    is_bn = True
    eps = 0.005

    batch, length = 2, 16

    key = jax.random.PRNGKey(0)
    k_x, k_w, k_g, k_b, k_rm, k_rv = jax.random.split(key, 6)

    # Deterministic parameter init (kaiming-uniform-ish bound like PyTorch).
    fan_in = in_channel * kernel_size
    bound = 1.0 / jnp.sqrt(fan_in)
    weight = jax.random.uniform(
        k_w, (out_channel, in_channel, kernel_size),
        minval=-bound, maxval=bound, dtype=jnp.float32)

    if is_bn:
        gamma = jax.random.uniform(k_g, (out_channel,), minval=0.5, maxval=1.5)
        beta = jax.random.uniform(k_b, (out_channel,), minval=-0.5, maxval=0.5)
        running_mean = jax.random.uniform(k_rm, (out_channel,),
                                          minval=-0.2, maxval=0.2)
        running_var = jax.random.uniform(k_rv, (out_channel,),
                                         minval=0.5, maxval=1.5)
        scale = gamma / jnp.sqrt(running_var + eps)
        shift = beta - running_mean * scale
    else:
        conv_bias = jax.random.uniform(k_b, (out_channel,),
                                       minval=-bound, maxval=bound)
        scale = jnp.ones((out_channel,), jnp.float32)
        shift = conv_bias

    x = jax.random.normal(k_x, (batch, in_channel, length), dtype=jnp.float32)

    out = conv1d_bn_relu(x, weight, scale, shift,
                         kernel_size=kernel_size, stride=stride,
                         padding=padding)
    out = jax.block_until_ready(out)

    ref = reference_conv1d_bn_relu(x, weight, scale, shift,
                                   stride=stride, padding=padding)
    l_out = (length + 2 * padding - kernel_size) // stride + 1
    assert out.shape == ref.shape == (batch, out_channel, l_out)
    assert jnp.allclose(out, ref, atol=1e-5, rtol=1e-5), \
        f"max abs err = {jnp.max(jnp.abs(out - ref))}"

    print("KERNEL_OK")
</pallas_src>

<mosaic_0001>
module attributes {stable_mosaic.version = 11 : i64} {
  func.func @_conv_bn_relu_kernel(%arg0: i32, %arg1: memref<16x128xf32, #tpu.memory_space<vmem>>, %arg2: memref<8x16xf32, #tpu.memory_space<vmem>>, %arg3: memref<8x1xf32, #tpu.memory_space<vmem>>, %arg4: memref<8x128xf32, #tpu.memory_space<vmem>>) attributes {dimension_semantics = [#tpu.dimension_semantics<parallel>], iteration_bounds = array<i64: 1>, scalar_prefetch = 0 : i64, scratch_operands = 0 : i64, tpu.core_type = #tpu.core_type<tc>, window_params = [{transform_indices = @transform_0, window_bounds = array<i64: 16, 128>}, {pipeline_mode = #tpu.pipeline_mode<synchronous>, transform_indices = @transform_1, window_bounds = array<i64: 8, 16>}, {pipeline_mode = #tpu.pipeline_mode<synchronous>, transform_indices = @transform_2, window_bounds = array<i64: 8, 1>}, {transform_indices = @transform_3, window_bounds = array<i64: 8, 128>}]} {
    %c0 = arith.constant 0 : index
    %c0_0 = arith.constant 0 : index
    %0 = vector.load %arg2[%c0, %c0_0] : memref<8x16xf32, #tpu.memory_space<vmem>>, vector<8x16xf32>
    %c0_1 = arith.constant 0 : index
    %c0_2 = arith.constant 0 : index
    %1 = vector.load %arg1[%c0_1, %c0_2] : memref<16x128xf32, #tpu.memory_space<vmem>>, vector<16x128xf32>
    %cst = arith.constant dense<0.000000e+00> : vector<8x128xf32>
    %2 = tpu.matmul %0, %1, %cst {dimension_numbers = #tpu.dot_dimension_numbers<[1], [0], [0], [1], [0, 0, 1, 1], [], []>} : vector<8x16xf32>, vector<16x128xf32>, vector<8x128xf32> -> vector<8x128xf32>
    %c0_3 = arith.constant 0 : index
    %c0_4 = arith.constant 0 : index
    %3 = vector.load %arg3[%c0_3, %c0_4] : memref<8x1xf32, #tpu.memory_space<vmem>>, vector<8x1xf32>
    %4 = vector.broadcast %3 : vector<8x1xf32> to vector<8x128xf32>
    %5 = arith.addf %2, %4 : vector<8x128xf32>
    %cst_5 = arith.constant 0.000000e+00 : f32
    %6 = vector.broadcast %cst_5 : f32 to vector<8x128xf32>
    %7 = arith.maximumf %5, %6 : vector<8x128xf32>
    %c0_6 = arith.constant 0 : index
    %c0_7 = arith.constant 0 : index
    %8 = vector.load %arg4[%c0_6, %c0_7] : memref<8x128xf32, #tpu.memory_space<vmem>>, vector<8x128xf32>
    tpu.vector_store %arg4[%c0_6, %c0_7], %7 {strides = array<i32>} : memref<8x128xf32, #tpu.memory_space<vmem>>, vector<8x128xf32>,
    return
  }
  func.func @transform_0(%arg0: i32) -> (i32, i32) {
    %c0_i32 = arith.constant 0 : i32
    %c0_i32_0 = arith.constant 0 : i32
    return %c0_i32, %arg0 : i32, i32
  }
  func.func @transform_1(%arg0: i32) -> (i32, i32) {
    %c0_i32 = arith.constant 0 : i32
    %c0_i32_0 = arith.constant 0 : i32
    %c0_i32_1 = arith.constant 0 : i32
    return %c0_i32, %c0_i32_0 : i32, i32
  }
  func.func @transform_2(%arg0: i32) -> (i32, i32) {
    %c0_i32 = arith.constant 0 : i32
    %c0_i32_0 = arith.constant 0 : i32
    %c0_i32_1 = arith.constant 0 : i32
    return %c0_i32, %c0_i32_0 : i32, i32
  }
  func.func @transform_3(%arg0: i32) -> (i32, i32) {
    %c0_i32 = arith.constant 0 : i32
    %c0_i32_0 = arith.constant 0 : i32
    return %c0_i32, %arg0 : i32, i32
  }
}

</mosaic_0001>

<bundles_post_ra>
// kernel: conv1d_bn_relu.1
= control target key start
LH: loop header
LB: loop body
LE: loop exit
PB: predicated region body
PF: predicated region fallthrough
CT: control target
= control target key end

     0   :  { %v122_v0 = vmov 0.0|0.0   ;;  %vm123_vm0 = vmmov 0   ;;  %v124_v3 = vmov 0.0   ;;  %v125_v5 = vmov 0   ;;  %s161_s0 = inlined_call_operand.vmem [shape: f32[16,128], index: 0, kind: input, shape index: {}]   ;;  %s162_s2 = inlined_call_operand.vmem [shape: f32[8,1], index: 2, kind: input, shape index: {}]   ;;  %s163_s1 = inlined_call_operand.vmem [shape: f32[8,16], index: 1, kind: input, shape index: {}]   ;;  %s164_s3 = inlined_call_operand.vmem [shape: f32[8,128], index: 3, kind: output, shape index: {}]  }
   0x1   :  { %114 = vmatprep.subr.bf16.mxu0 %v122_v0  ;;  %v15_v1 = vld [vmem:[%s161_s0] sm:$0xff]  ;;  %v16_v2 = vld [vmem:[%s161_s0 + $0x8] sm:$0xff]  ;;  %111 = vmatprep.mubr.msk.f32.mxu0 %vm123_vm0, %v124_v3  ;;  %vm23_vm1 = vcmask 130048  }
   0x2   :  { %v115_v4 = vpack.c.bf16 %v16_v2, %v15_v1  ;;  %121 = vset.pattern.permute.xlu0 %v125_v5  ;;  %v17_v6 = vld [vmem:[%s162_s2] sm:$0xff] }
   0x3   :  { %20 = vperm.xlu0 %121, %v17_v6   ;;  %v14_v7 = vld [vmem:[%s163_s1] sm:$0xff] }
   0x4   :  { %116 = vmatpush3.bf16.msra.mxu0 %v115_v4 }
   0x7   :  { %112 = vmatmul.mubr.msk.f32.vlgmr.msra.gmra.mrb[0].mxu0 %vm23_vm1, %v14_v7 }
  0x82   :  { %v21_v8 = vpop.permute.xlu0 %20 }
  0xda   :  { %v93_v9 = vpop.f32.mrb[0].mxu0 }
  0xdb   :  { %v94_v10 = vadd.f32 %v93_v9, %v21_v8  ;;  %v113_v11 = vpop.f32.mrb[1].mxu0 }
  0xdd   :  { %v97_v12 = vmax.f32 %v94_v10, 0.0 }
  0xdf   :  { %98 = vst [vmem:[%s164_s3] sm:$0xff] %v97_v12 }

</bundles_post_ra>
